<compile_context>
chip_gen: v7x
topology: tpu7x:2x2x1
jax: 0.10.0
libtpu: 0.0.40
codegen_flags: <defaults>
</compile_context>

<pallas_src>
import jax
import jax.numpy as jnp
from jax.experimental import pallas as pl
from jax.experimental.pallas import tpu as pltpu


def _color_correction_kernel(x_ref, w1t_ref, b1_ref, w2t_ref, b2_ref, o_ref):
    # x_ref/o_ref : (1, C, TN)
    # w1t_ref     : (hidden, C)    b1_ref : (hidden, 1)
    # w2t_ref     : (C, hidden)    b2_ref : (C, 1)
    x = x_ref[0]                                            # (C, TN) f32, lane-dense

    # conv1 (1x1, C -> hidden) on the MXU: (hidden, C) @ (C, TN).
    h = jnp.dot(w1t_ref[...], x, preferred_element_type=jnp.float32)
    h = jnp.maximum(h + b1_ref[...], 0.0)                   # bias + ReLU, one VALU pass

    # conv2 (1x1, hidden -> C) on the MXU: (C, hidden) @ (hidden, TN).
    y = jnp.dot(w2t_ref[...], h, preferred_element_type=jnp.float32)

    # bias + residual add, lane-dense store (only C sublanes live here).
    o_ref[0] = (x + y + b2_ref[...]).astype(o_ref.dtype)


def color_correction(x_nchw, w1, b1, w2, b2, *, tn_max=32768):
    """x_nchw: [B, C, H, W] f32.  w1: (C, hidden), b1: (hidden,), w2: (hidden, C), b2: (C,)."""
    B, C, H, W = x_nchw.shape
    hidden = w1.shape[1]
    n_pix = H * W

    # Channels on sublane, pixels on lane: a free reshape of contiguous NCHW.
    x_mat = x_nchw.reshape(B, C, n_pix)

    # Lane tile: multiple of 128, capped at tn_max (fits default scoped VMEM
    # on v5e/v6e/v7x).  No wrapper-side padding: Pallas masks the ragged last
    # block's writeback, so the grid just uses cdiv.
    n128 = pl.cdiv(n_pix, 128) * 128
    tn = min(tn_max, n128)
    n_tiles = pl.cdiv(n_pix, tn)

    # v7x has 2 TensorCores: make sure there are >= 2 grid tiles when possible.
    if B * n_tiles < 2 and n128 >= 256:
        tn = pl.cdiv(n128 // 2, 128) * 128
        n_tiles = pl.cdiv(n_pix, tn)

    # Weight prep (tiny, done once outside the kernel).
    w1t = w1.T                                   # (hidden, C)
    w2t = w2.T                                   # (C, hidden)
    b1_col = b1.reshape(hidden, 1)
    b2_col = b2.reshape(C, 1)

    grid = (B, n_tiles)

    out_mat = pl.pallas_call(
        _color_correction_kernel,
        out_shape=jax.ShapeDtypeStruct((B, C, n_pix), x_mat.dtype),
        grid_spec=pltpu.PrefetchScalarGridSpec(
            num_scalar_prefetch=0,
            grid=grid,
            in_specs=[
                pl.BlockSpec((1, C, tn), lambda b, t: (b, 0, t)),   # x tile
                pl.BlockSpec((hidden, C), lambda b, t: (0, 0)),     # W1^T (full)
                pl.BlockSpec((hidden, 1), lambda b, t: (0, 0)),     # b1   (full)
                pl.BlockSpec((C, hidden), lambda b, t: (0, 0)),     # W2^T (full)
                pl.BlockSpec((C, 1), lambda b, t: (0, 0)),          # b2   (full)
            ],
            out_specs=pl.BlockSpec((1, C, tn), lambda b, t: (b, 0, t)),
        ),
        compiler_params=pltpu.CompilerParams(
            dimension_semantics=("parallel", "parallel"),
        ),
    )(x_mat, w1t, b1_col, w2t, b2_col)

    # (B, C, H*W) -> (B, C, H, W) reshape is free.
    return out_mat.reshape(B, C, H, W)


def _reference(x_nchw, w1, b1, w2, b2):
    """Pure-JAX reference matching the PyTorch forward (f32-precise matmuls)."""
    hp = jax.lax.Precision.HIGHEST
    x_mat = jnp.transpose(x_nchw, (0, 2, 3, 1))            # NHWC
    h = jnp.maximum(jnp.matmul(x_mat, w1, precision=hp) + b1, 0.0)
    y = jnp.matmul(h, w2, precision=hp) + b2
    out = x_mat + y
    return jnp.transpose(out, (0, 3, 1, 2))


if __name__ == "__main__":
    key = jax.random.PRNGKey(0)
    k_x, k_w1, k_b1, k_w2, k_b2 = jax.random.split(key, 5)

    B, C, H, W = 2, 3, 16, 16
    hidden = 64

    x = jax.random.normal(k_x, (B, C, H, W), dtype=jnp.float32)

    # Parameters stored as (in, out) so y = x @ W, i.e. W = torch_weight[:, :, 0, 0].T
    w1 = jax.random.normal(k_w1, (C, hidden), dtype=jnp.float32) * 0.1
    b1 = jax.random.normal(k_b1, (hidden,), dtype=jnp.float32) * 0.1
    w2 = jax.random.normal(k_w2, (hidden, C), dtype=jnp.float32) * 0.1
    b2 = jax.random.normal(k_b2, (C,), dtype=jnp.float32) * 0.1

    out = jax.block_until_ready(color_correction(x, w1, b1, w2, b2))
    ref = jax.block_until_ready(_reference(x, w1, b1, w2, b2))

    assert out.shape == (B, C, H, W)
    assert jnp.allclose(out, ref, atol=1e-4, rtol=1e-4)

    print("KERNEL_OK")
</pallas_src>

<mosaic_0001>
module attributes {stable_mosaic.version = 11 : i64} {
  func.func @_color_correction_kernel(%arg0: i32, %arg1: i32, %arg2: memref<1x3x256xf32, #tpu.memory_space<vmem>>, %arg3: memref<64x3xf32, #tpu.memory_space<vmem>>, %arg4: memref<64x1xf32, #tpu.memory_space<vmem>>, %arg5: memref<3x64xf32, #tpu.memory_space<vmem>>, %arg6: memref<3x1xf32, #tpu.memory_space<vmem>>, %arg7: memref<1x3x256xf32, #tpu.memory_space<vmem>>) attributes {dimension_semantics = [#tpu.dimension_semantics<parallel>, #tpu.dimension_semantics<parallel>], iteration_bounds = array<i64: 2, 1>, scalar_prefetch = 0 : i64, scratch_operands = 0 : i64, tpu.core_type = #tpu.core_type<tc>, window_params = [{transform_indices = @transform_0, window_bounds = array<i64: 1, 3, 256>}, {pipeline_mode = #tpu.pipeline_mode<synchronous>, transform_indices = @transform_1, window_bounds = array<i64: 64, 3>}, {pipeline_mode = #tpu.pipeline_mode<synchronous>, transform_indices = @transform_2, window_bounds = array<i64: 64, 1>}, {pipeline_mode = #tpu.pipeline_mode<synchronous>, transform_indices = @transform_3, window_bounds = array<i64: 3, 64>}, {pipeline_mode = #tpu.pipeline_mode<synchronous>, transform_indices = @transform_4, window_bounds = array<i64: 3, 1>}, {transform_indices = @transform_5, window_bounds = array<i64: 1, 3, 256>}]} {
    %c0 = arith.constant 0 : index
    %c0_0 = arith.constant 0 : index
    %c0_1 = arith.constant 0 : index
    %0 = vector.load %arg2[%c0, %c0_0, %c0_1] : memref<1x3x256xf32, #tpu.memory_space<vmem>>, vector<1x3x256xf32>
    %1 = vector.shape_cast %0 : vector<1x3x256xf32> to vector<3x256xf32>
    %c0_2 = arith.constant 0 : index
    %c0_3 = arith.constant 0 : index
    %2 = vector.load %arg3[%c0_2, %c0_3] : memref<64x3xf32, #tpu.memory_space<vmem>>, vector<64x3xf32>
    %cst = arith.constant dense<0.000000e+00> : vector<64x256xf32>
    %3 = tpu.matmul %2, %1, %cst {dimension_numbers = #tpu.dot_dimension_numbers<[1], [0], [0], [1], [0, 0, 1, 1], [], []>} : vector<64x3xf32>, vector<3x256xf32>, vector<64x256xf32> -> vector<64x256xf32>
    %c0_4 = arith.constant 0 : index
    %c0_5 = arith.constant 0 : index
    %4 = vector.load %arg4[%c0_4, %c0_5] : memref<64x1xf32, #tpu.memory_space<vmem>>, vector<64x1xf32>
    %5 = vector.broadcast %4 : vector<64x1xf32> to vector<64x256xf32>
    %6 = arith.addf %3, %5 : vector<64x256xf32>
    %cst_6 = arith.constant 0.000000e+00 : f32
    %7 = vector.broadcast %cst_6 : f32 to vector<64x256xf32>
    %8 = arith.maximumf %6, %7 : vector<64x256xf32>
    %c0_7 = arith.constant 0 : index
    %c0_8 = arith.constant 0 : index
    %9 = vector.load %arg5[%c0_7, %c0_8] : memref<3x64xf32, #tpu.memory_space<vmem>>, vector<3x64xf32>
    %cst_9 = arith.constant dense<0.000000e+00> : vector<3x256xf32>
    %10 = tpu.matmul %9, %8, %cst_9 {dimension_numbers = #tpu.dot_dimension_numbers<[1], [0], [0], [1], [0, 0, 1, 1], [], []>} : vector<3x64xf32>, vector<64x256xf32>, vector<3x256xf32> -> vector<3x256xf32>
    %11 = arith.addf %1, %10 : vector<3x256xf32>
    %c0_10 = arith.constant 0 : index
    %c0_11 = arith.constant 0 : index
    %12 = vector.load %arg6[%c0_10, %c0_11] : memref<3x1xf32, #tpu.memory_space<vmem>>, vector<3x1xf32>
    %13 = vector.broadcast %12 : vector<3x1xf32> to vector<3x256xf32>
    %14 = arith.addf %11, %13 : vector<3x256xf32>
    %c0_12 = arith.constant 0 : index
    %c0_13 = arith.constant 0 : index
    %c0_14 = arith.constant 0 : index
    %15 = vector.load %arg7[%c0_12, %c0_13, %c0_14] : memref<1x3x256xf32, #tpu.memory_space<vmem>>, vector<1x3x256xf32>
    %16 = vector.shape_cast %15 : vector<1x3x256xf32> to vector<3x256xf32>
    %17 = vector.shape_cast %14 : vector<3x256xf32> to vector<1x3x256xf32>
    tpu.vector_store %arg7[%c0_12, %c0_13, %c0_14], %17 {strides = array<i32>} : memref<1x3x256xf32, #tpu.memory_space<vmem>>, vector<1x3x256xf32>,
    return
  }
  func.func @transform_0(%arg0: i32, %arg1: i32) -> (i32, i32, i32) {
    %c0_i32 = arith.constant 0 : i32
    %c0_i32_0 = arith.constant 0 : i32
    return %arg0, %c0_i32, %arg1 : i32, i32, i32
  }
  func.func @transform_1(%arg0: i32, %arg1: i32) -> (i32, i32) {
    %c0_i32 = arith.constant 0 : i32
    %c0_i32_0 = arith.constant 0 : i32
    %c0_i32_1 = arith.constant 0 : i32
    return %c0_i32, %c0_i32_0 : i32, i32
  }
  func.func @transform_2(%arg0: i32, %arg1: i32) -> (i32, i32) {
    %c0_i32 = arith.constant 0 : i32
    %c0_i32_0 = arith.constant 0 : i32
    %c0_i32_1 = arith.constant 0 : i32
    return %c0_i32, %c0_i32_0 : i32, i32
  }
  func.func @transform_3(%arg0: i32, %arg1: i32) -> (i32, i32) {
    %c0_i32 = arith.constant 0 : i32
    %c0_i32_0 = arith.constant 0 : i32
    %c0_i32_1 = arith.constant 0 : i32
    return %c0_i32, %c0_i32_0 : i32, i32
  }
  func.func @transform_4(%arg0: i32, %arg1: i32) -> (i32, i32) {
    %c0_i32 = arith.constant 0 : i32
    %c0_i32_0 = arith.constant 0 : i32
    %c0_i32_1 = arith.constant 0 : i32
    return %c0_i32, %c0_i32_0 : i32, i32
  }
  func.func @transform_5(%arg0: i32, %arg1: i32) -> (i32, i32, i32) {
    %c0_i32 = arith.constant 0 : i32
    %c0_i32_0 = arith.constant 0 : i32
    return %arg0, %c0_i32, %arg1 : i32, i32, i32
  }
}

</mosaic_0001>

<bundles_post_ra>
// kernel: tpu_custom_call.1
= control target key start
LH: loop header
LB: loop body
LE: loop exit
PB: predicated region body
PF: predicated region fallthrough
CT: control target
= control target key end

     0   :  { %s792_s18 = smov 0   ;;  %s794_s19 = smov 0   ;;  %s900_s0 = inlined_call_operand.vmem [shape: f32[2,3,256], index: 0, kind: input, shape index: {}]   ;;  %s901_s1 = inlined_call_operand.vmem [shape: f32[64,3], index: 1, kind: input, shape index: {}]   ;;  %s902_s2 = inlined_call_operand.vmem [shape: f32[64,1], index: 2, kind: input, shape index: {}]   ;;  %s903_s3 = inlined_call_operand.vmem [shape: f32[3,64], index: 3, kind: input, shape index: {}]   ;;  %s904_s4 = inlined_call_operand.vmem [shape: f32[3,1], index: 4, kind: input, shape index: {}]   ;;  %s905_s5 = inlined_call_operand.vmem [shape: f32[2,3,256], index: 5, kind: output, shape index: {}]  }
   0x1   :  { %s796_s20 = smov 0  }
   0x2 LB: > { %s27_s21 = sadd.s32 1, %s753_s19  ;;  %p669_p0 = scmp.ge.s32.totalorder %s757_s20, 1  ;;  %s757_s20 = sphi %s796_s20, %s15_s20   ;;  %s753_s19 = sphi %s794_s19, %s907_s19   ;;  %s749_s18 = sphi %s792_s18, %s906_s18  }
   0x3   : > { %p29_p1 = scmp.ge.s32.totalorder %s27_s21, 2  ;;  %p208_p2 = scmp.lt.s32.totalorder %s757_s20, 3 }
   0x5   : > { %s909_s21 = smov (%p29_p1, %s27_s21), 0  ;;  %p209_p3 = pnand %p669_p0, %p208_p2 }
   0x6   : > { %p245_p4 = scmp.lt.s32.totalorder (!%p209_p3), %s749_s18, 1  ;;  %v759_v0 = vmov (!%p209_p3), 0.0   ;;  %v760_v1 = vmov (!%p209_p3), 0   ;;  %v273_v2 = vld [vmem:[%s902_s2] sm:$0xff] (!%p209_p3)  ;;  %v275_v3 = vld [vmem:[%s902_s2 + $0x10] sm:$0xff] (!%p209_p3)  ;;  %v274_v4 = vld [vmem:[%s902_s2 + $0x8] sm:$0xff] (!%p209_p3) }
   0x7   : > { %212 = sbr.rel (%p209_p3) target bundleno = 493 (0x1ed), region = 40  ;;  %417 = vmatprep.mubr.f32.mxu0 (!%p209_p3), %v759_v0  ;;  %551 = vmatprep.mubr.f32.mxu1 (!%p209_p3), %v759_v0  ;;  %v276_v5 = vld [vmem:[%s902_s2 + $0x18] sm:$0xff] (!%p209_p3)  ;;  %vm348_vm0 = vcmask (!%p209_p3), 1042432   ;;  %v265_v8 = vld [vmem:[%s901_s1] sm:$0xff] (!%p209_p3)  ;;  %vm323_vm1 = vcmask (!%p209_p3), 23552   ;;  %v278_v10 = vld [vmem:[%s902_s2 + $0x28] sm:$0xff] (!%p209_p3) }
   0x8   : > { %732 = vset.pattern.permute.xlu0 (!%p209_p3), %v760_v1  ;;  %733 = vset.pattern.permute.xlu1 (!%p209_p3), %v760_v1  ;;  %v277_v9 = vld [vmem:[%s902_s2 + $0x20] sm:$0xff] (!%p209_p3)  ;;  %v266_v11 = vld [vmem:[%s901_s1 + $0x8] sm:$0xff] (!%p209_p3)  ;;  %v279_v12 = vld [vmem:[%s902_s2 + $0x30] sm:$0xff] (!%p209_p3)  ;;  %vm483_vm2 = vcmask (!%p209_p3), 523264  }
   0x9   : > { %283 = vperm.xlu0 (!%p209_p3), %732, %v273_v2   ;;  %293 = vperm.xlu1 (!%p209_p3), %733, %v275_v3   ;;  %v280_v13 = vld [vmem:[%s902_s2 + $0x38] sm:$0xff] (!%p209_p3)  ;;  %v267_v14 = vld [vmem:[%s901_s1 + $0x10] sm:$0xff] (!%p209_p3)  ;;  %v563_v15 = vld [vmem:[%s904_s4] sm:$0x7] (!%p209_p3) }
   0xa   : > { %v268_v16 = vld [vmem:[%s901_s1 + $0x18] sm:$0xff] (!%p209_p3)  ;;  %v269_v17 = vld [vmem:[%s901_s1 + $0x20] sm:$0xff] (!%p209_p3)  ;;  %v270_v18 = vld [vmem:[%s901_s1 + $0x28] sm:$0xff] (!%p209_p3) }
   0xb   : > { %v271_v19 = vld [vmem:[%s901_s1 + $0x30] sm:$0xff] (!%p209_p3)  ;;  %v272_v20 = vld [vmem:[%s901_s1 + $0x38] sm:$0xff] (!%p209_p3) }
   0xd   : > { %288 = vperm.xlu0 (!%p209_p3), %732, %v274_v4   ;;  %298 = vperm.xlu1 (!%p209_p3), %733, %v276_v5  }
   0xe   : > { %s911_s18 = smov (!%p245_p4, %s749_s18), 1 }
   0xf   : > { %s687_s26 = sshll.u32 %s911_s18, 3 }
  0x10   : > { %s252_s29 = scalar_lea.vmem %s900_s0, %s687_s26  ;;  %s262_s23 = scalar_lea.vmem %s905_s5, %s687_s26 }
  0x11   : > { %v830_v6 = vld [vmem:[%s252_s29] sm:$0x77]  ;;  %303 = vperm.xlu0 %732, %v277_v9   ;;  %308 = vperm.xlu1 %733, %v278_v10  }
  0x12   : > { %v322_v7 = vcombine.high %v830_v6, %v830_v6 }
  0x14   : > { %674 = vmatprep.subr.msk.mxu0 %vm348_vm0, %v322_v7 }
  0x15   : > { %675 = vmatpush1.msk.msra.mxu0 %vm348_vm0, %v830_v6  ;;  %313 = vperm.xlu0 %732, %v279_v12  }
  0x16   : > { %676 = vmatmul.mubr.msk.f32.vlgmr.msra.gmra.mrb[0].mxu0 %vm323_vm1, %v265_v8  ;;  %318 = vperm.xlu1 %733, %v280_v13  }
  0x17   : > { %423 = vmatprep.mubr.f32.mxu0 %v759_v0 }
  0x19   : > { %566 = vperm.xlu0 %732, %v563_v15  }
  0x1a   : > { %677 = vmatmul.mubr.msk.f32.gmra.mrb[2].mxu0 %vm323_vm1, %v266_v11 }
  0x1b   : > { %429 = vmatprep.mubr.f32.mxu0 %v759_v0 }
  0x1e   : > { %678 = vmatmul.mubr.msk.f32.gmra.mrb[4].mxu0 %vm323_vm1, %v267_v14 }
  0x1f   : > { %435 = vmatprep.mubr.f32.mxu0 %v759_v0 }
  0x22   : > { %679 = vmatmul.mubr.msk.f32.gmra.mrb[6].mxu0 %vm323_vm1, %v268_v16 }
  0x23   : > { %441 = vmatprep.mubr.f32.mxu0 %v759_v0 }
  0x26   : > { %680 = vmatmul.mubr.msk.f32.gmra.mrb[8].mxu0 %vm323_vm1, %v269_v17 }
  0x27   : > { %447 = vmatprep.mubr.f32.mxu0 %v759_v0 }
  0x2a   : > { %681 = vmatmul.mubr.msk.f32.gmra.mrb[10].mxu0 %vm323_vm1, %v270_v18 }
  0x2b   : > { %453 = vmatprep.mubr.f32.mxu0 %v759_v0 }
  0x2e   : > { %682 = vmatmul.mubr.msk.f32.gmra.mrb[12].mxu0 %vm323_vm1, %v271_v19 }
  0x2f   : > { %459 = vmatprep.mubr.f32.mxu0 %v759_v0 }
  0x32   : > { %683 = vmatmul.mubr.msk.f32.gmra.mrb[14].mxu0 %vm323_vm1, %v272_v20 }
  0x88   : > { %v284_v21 = vpop.permute.xlu0 %283  ;;  %v294_v30 = vpop.permute.xlu1 %293 }
  0x8c   : > { %v289_v25 = vpop.permute.xlu0 %288  ;;  %v299_v41 = vpop.permute.xlu1 %298 }
  0x90   : > { %v304_v54 = vpop.permute.xlu0 %303  ;;  %v309_v57 = vpop.permute.xlu1 %308 }
  0x94   : > { %v314_v7 = vpop.permute.xlu0 %313 }
  0x95   : > { %v319_v10 = vpop.permute.xlu1 %318 }
  0xe9   : > { %v419_v22 = vpop.f32.mrb[0].mxu0 }
  0xea   : > { %v421_v23 = vpop.f32.mrb[1].mxu0  ;;  %v420_v24 = vadd.f32 %v419_v22, %v284_v21  ;;  %v482_v22 = vld [vmem:[%s903_s3] sm:$0x7] }
  0xeb   : > { %v422_v26 = vadd.f32 %v421_v23, %v284_v21  ;;  %v761_v23 = vmov 839922192  }
  0xec   : > { %v466_v32 = vmax.f32 %v420_v24, 0.0  ;;  %v569_v24 = vunpack.c.l.s4 %v761_v23 }
  0xed   : > { %v425_v27 = vpop.f32.mrb[2].mxu0  ;;  %v467_v34 = vmax.f32 %v422_v26, 0.0 }
  0xee   : > { %v426_v28 = vadd.f32 %v425_v27, %v289_v25  ;;  %v427_v29 = vpop.f32.mrb[3].mxu0  ;;  %v570_v26 = vunpack.c.0.s8 %v569_v24 }
  0xef   : > { %v428_v31 = vadd.f32 %v427_v29, %v289_v25  ;;  %v571_v25 = vlaneseq }
  0xf0   : > { %v468_v33 = vmax.f32 %v426_v28, 0.0 }
  0xf1   : > { %v469_v35 = vmax.f32 %v428_v31, 0.0  ;;  %v431_v36 = vpop.f32.mrb[4].mxu0  ;;  %v572_v27 = vshrl.u32 %v571_v25, 7 }
  0xf2   : > { %v433_v37 = vpop.f32.mrb[5].mxu0  ;;  %v691_v38 = vpack.c.bf16 %v468_v33, %v466_v32  ;;  %v432_v40 = vadd.f32 %v431_v36, %v294_v30 }
  0xf3   : > { %v689_v39 = vpack.c.bf16 %v469_v35, %v467_v34  ;;  %v434_v42 = vadd.f32 %v433_v37, %v294_v30  ;;  %v573_v28 = vsub.s32 %v570_v26, %v572_v27  ;;  %v567_v30 = vpop.permute.xlu0 %566 }
  0xf4   : > { %v470_v47 = vmax.f32 %v432_v40, 0.0 }
  0xf5   : > { %v437_v43 = vpop.f32.mrb[6].mxu0  ;;  %690 = vmatprep.subr.bf16.mxu1 %v689_v39  ;;  %v471_v49 = vmax.f32 %v434_v42, 0.0  ;;  %v574_v33 = vrot.slane %v567_v30, %v573_v28 }
  0xf6   : > { %v438_v44 = vadd.f32 %v437_v43, %v299_v41  ;;  %v439_v45 = vpop.f32.mrb[7].mxu0  ;;  %692 = vmatpush1.bf16.msra.mxu1 %v691_v38 }
  0xf7   : > { %v440_v46 = vadd.f32 %v439_v45, %v299_v41 }
  0xf8   : > { %v472_v48 = vmax.f32 %v438_v44, 0.0 }
  0xf9   : > { %v473_v50 = vmax.f32 %v440_v46, 0.0  ;;  %v443_v51 = vpop.f32.mrb[8].mxu0 }
  0xfa   : > { %v695_v52 = vpack.c.bf16 %v472_v48, %v470_v47  ;;  %v445_v53 = vpop.f32.mrb[9].mxu0  ;;  %v444_v56 = vadd.f32 %v443_v51, %v304_v54 }
  0xfb   : > { %v693_v55 = vpack.c.bf16 %v473_v50, %v471_v49  ;;  %v446_v58 = vadd.f32 %v445_v53, %v304_v54 }
  0xfc   : > { %v474_v63 = vmax.f32 %v444_v56, 0.0 }
  0xfd   : > { %v449_v59 = vpop.f32.mrb[10].mxu0  ;;  %694 = vmatprep.subr.bf16.mxu1 %v693_v55  ;;  %v475_v1 = vmax.f32 %v446_v58, 0.0 }
  0xfe   : > { %v450_v60 = vadd.f32 %v449_v59, %v309_v57  ;;  %v451_v61 = vpop.f32.mrb[11].mxu0  ;;  %696 = vmatpush1.bf16.msra.mxu1 %v695_v52 }
  0xff   : > { %v452_v62 = vadd.f32 %v451_v61, %v309_v57 }
 0x100   : > { %v476_v0 = vmax.f32 %v450_v60, 0.0 }
 0x101   : > { %v477_v2 = vmax.f32 %v452_v62, 0.0  ;;  %v455_v3 = vpop.f32.mrb[12].mxu0 }
 0x102   : > { %v699_v4 = vpack.c.bf16 %v476_v0, %v474_v63  ;;  %v457_v5 = vpop.f32.mrb[13].mxu0  ;;  %v456_v9 = vadd.f32 %v455_v3, %v314_v7 }
 0x103   : > { %v697_v8 = vpack.c.bf16 %v477_v2, %v475_v1  ;;  %v458_v11 = vadd.f32 %v457_v5, %v314_v7 }
 0x104   : > { %v478_v16 = vmax.f32 %v456_v9, 0.0 }
 0x105   : > { %v461_v12 = vpop.f32.mrb[14].mxu0  ;;  %698 = vmatprep.subr.bf16.mxu1 %v697_v8  ;;  %v479_v18 = vmax.f32 %v458_v11, 0.0 }
 0x106   : > { %v462_v13 = vadd.f32 %v461_v12, %v319_v10  ;;  %v463_v14 = vpop.f32.mrb[15].mxu0  ;;  %700 = vmatpush1.bf16.msra.mxu1 %v699_v4 }
 0x107   : > { %v464_v15 = vadd.f32 %v463_v14, %v319_v10 }
 0x108   : > { %v480_v17 = vmax.f32 %v462_v13, 0.0 }
 0x109   : > { %v481_v19 = vmax.f32 %v464_v15, 0.0 }
 0x10a   : > { %v703_v20 = vpack.c.bf16 %v480_v17, %v478_v16 }
 0x10b   : > { %v701_v21 = vpack.c.bf16 %v481_v19, %v479_v18 }
 0x10d   : > { %702 = vmatprep.subr.bf16.mxu1 %v701_v21 }
 0x10e   : > { %704 = vmatpush1.bf16.msra.mxu1 %v703_v20 }
 0x111   : > { %684 = vmatmul.mubr.msk.f32.vlgmr.msra.gmra.mrb[0].mxu1 %vm483_vm2, %v482_v22 }
 0x1e4   : > { %v553_v29 = vpop.f32.mrb[0].mxu1 }
 0x1e5   : > { %v555_v31 = vpop.f32.mrb[1].mxu1 }
 0x1e6   : > { %v560_v32 = vcombine.low %v553_v29, %v555_v31 }
 0x1e8   : > { %v562_v34 = vadd.f32 %v560_v32, %v830_v6 }
 0x1ea   : > { %v576_v35 = vadd.f32 %v574_v33, %v562_v34 }
 0x1ec   : > { %577 = vst [vmem:[%s262_s23] sm:$0x77] %v576_v35 }
 0x1ed PF: > { %s15_s20 = sadd.s32 1, %s757_s20   ;;  %s906_s18 = smov %s753_s19 }
 0x1ee   : > { %p12_p5 = scmp.ge.s32.totalorder %s15_s20, 4   ;;  %s907_s19 = smov %s909_s21 }
 0x1f0   :  { %14 = sbr.rel (!%p12_p5) target bundleno = 2 (0x2), region = 70 }

</bundles_post_ra>
